<compile_context>
chip_gen: v7x
topology: tpu7x:2x2x1
jax: 0.10.0
libtpu: 0.0.40
codegen_flags: <defaults>
</compile_context>

<pallas_src>
import functools

import jax
import jax.numpy as jnp
from jax.experimental import pallas as pl
from jax.experimental.pallas import tpu as pltpu


def _vanilla_net_kernel(x_ref, w13_ref, b1_ref, w2_ref, bo_ref, o_ref, *,
                        H, compute_dtype):
    x = x_ref[...]                                   # (tm, D_in) f32 from HBM
    xc = x.astype(compute_dtype)                     # in-kernel cast (VPU, free)

    # Fused first-layer + skip-path matmul:
    #   zc[:, :H] = x @ W1   (base_net hidden pre-activation)
    #   zc[:, H:] = x @ W3   (addition_net / skip path)
    zc = jnp.dot(xc, w13_ref[...], preferred_element_type=jnp.float32)
    z = zc[:, :H] + b1_ref[...]                      # (tm, H), f32
    skip = zc[:, H:]                                 # (tm, D_out), f32

    # sigmoid(z) == 0.5 * tanh(0.5 * z) + 0.5 -> one EUP transcendental, f32.
    h = 0.5 * jnp.tanh(0.5 * z) + 0.5

    # base_net second linear; accumulate into the skip path + combined bias.
    y = jnp.dot(h.astype(compute_dtype), w2_ref[...],
                preferred_element_type=jnp.float32)  # (tm, D_out)
    o_ref[...] = (y + skip + bo_ref[...]).astype(o_ref.dtype)


def pack_params(w1, b1, w2, b2, w3, b3, *, compute_dtype=jnp.bfloat16):
    """One-time parameter packing (hoisted off the forward hot path)."""
    D_in, H = w1.shape
    H2, D_out = w2.shape
    assert H2 == H
    assert w3.shape == (D_in, D_out)
    assert b1.shape == (H,) and b2.shape == (D_out,) and b3.shape == (D_out,)
    return {
        "w13": jnp.concatenate([w1, w3], axis=1).astype(compute_dtype),  # (D_in, H+D_out)
        "w2": w2.astype(compute_dtype),                                  # (H, D_out)
        "b1": b1.reshape(1, H).astype(jnp.float32),
        "bo": (b2 + b3).reshape(1, D_out).astype(jnp.float32),
        "H": H,
        "D_out": D_out,
        "compute_dtype": compute_dtype,
    }


def vanilla_net(x, params, *, tm=None):
    """VanillaNet forward: addition_net(x) + base_net(x). Returns (N, D_out) f32."""
    N, D_in = x.shape
    H, D_out = params["H"], params["D_out"]
    compute_dtype = params["compute_dtype"]
    w13, w2, b1, bo = params["w13"], params["w2"], params["b1"], params["bo"]
    assert w13.shape == (D_in, H + D_out)

    # Batch tile: big (amortize ~0.35 us/step overhead), multiple of 16 rows.
    if tm is None:
        tm = 4096
    tm = max(1, min(tm, N))
    tm = ((tm + 15) // 16) * 16
    steps = pl.cdiv(N, tm)
    # v7x has 2 TensorCores: prefer an even number of "parallel" grid steps.
    if steps > 1 and steps % 2 == 1:
        steps += 1
        tm = ((pl.cdiv(N, steps) + 15) // 16) * 16
        steps = pl.cdiv(N, tm)

    itemsize = jnp.dtype(compute_dtype).itemsize
    flops = 2 * N * (D_in * (H + D_out) + H * D_out)
    bytes_accessed = (N * D_in * 4                      # x (f32, cast in-kernel)
                      + D_in * (H + D_out) * itemsize   # W1 || W3 (resident)
                      + H * D_out * itemsize            # W2
                      + (H + D_out) * 4                 # biases (f32)
                      + N * D_out * 4)                  # unpadded f32 output
    cost = pl.CostEstimate(flops=flops, transcendentals=N * H,
                           bytes_accessed=bytes_accessed)

    kernel = functools.partial(_vanilla_net_kernel, H=H,
                               compute_dtype=compute_dtype)

    return pl.pallas_call(
        kernel,
        out_shape=jax.ShapeDtypeStruct((N, D_out), jnp.float32),
        grid_spec=pltpu.PrefetchScalarGridSpec(
            num_scalar_prefetch=0,
            grid=(steps,),
            in_specs=[
                pl.BlockSpec((tm, D_in), lambda i: (i, 0)),          # streamed x tile
                pl.BlockSpec((D_in, H + D_out), lambda i: (0, 0)),   # W1||W3 (resident)
                pl.BlockSpec((1, H), lambda i: (0, 0)),              # b1
                pl.BlockSpec((H, D_out), lambda i: (0, 0)),          # W2
                pl.BlockSpec((1, D_out), lambda i: (0, 0)),          # b2 + b3
            ],
            out_specs=pl.BlockSpec((tm, D_out), lambda i: (i, 0)),   # unpadded output
        ),
        compiler_params=pltpu.CompilerParams(
            dimension_semantics=("parallel",),        # megacore-shardable batch
            vmem_limit_bytes=32 * 1024 * 1024,        # safe on v5e/v6e/v7x
        ),
        cost_estimate=cost,
    )(x.astype(jnp.float32), w13, b1, w2, bo)


def reference_vanilla_net(x, w1, b1, w2, b2, w3, b3):
    # VanillaNet.forward: y1 = base_net(x); y = addition_net(x) + y1
    y1 = jax.nn.sigmoid(x @ w1 + b1) @ w2 + b2
    return (x @ w3 + b3) + y1


if __name__ == "__main__":
    # Small shapes: batch=256, D_in=32, H=64, D_out=16.
    N, D_in, H, D_out = 256, 32, 64, 16

    key = jax.random.PRNGKey(0)
    kx, kw1, kb1, kw2, kb2, kw3, kb3 = jax.random.split(key, 7)

    x = jax.random.normal(kx, (N, D_in), dtype=jnp.float32)

    # Deterministic params (mimic torch Linear's uniform bound), stored (in, out).
    bound1 = 1.0 / jnp.sqrt(D_in)
    w1 = jax.random.uniform(kw1, (D_in, H), minval=-bound1, maxval=bound1,
                            dtype=jnp.float32)
    b1 = jax.random.uniform(kb1, (H,), minval=-bound1, maxval=bound1,
                            dtype=jnp.float32)
    bound2 = 1.0 / jnp.sqrt(H)
    w2 = jax.random.uniform(kw2, (H, D_out), minval=-bound2, maxval=bound2,
                            dtype=jnp.float32)
    b2 = jax.random.uniform(kb2, (D_out,), minval=-bound2, maxval=bound2,
                            dtype=jnp.float32)
    w3 = jax.random.uniform(kw3, (D_in, D_out), minval=-bound1, maxval=bound1,
                            dtype=jnp.float32)
    b3 = jax.random.uniform(kb3, (D_out,), minval=-bound1, maxval=bound1,
                            dtype=jnp.float32)

    y_ref = reference_vanilla_net(x, w1, b1, w2, b2, w3, b3)

    # 1) f32 data path (multi-step grid): tight check against the reference.
    params_f32 = pack_params(w1, b1, w2, b2, w3, b3, compute_dtype=jnp.float32)
    y_f32 = jax.block_until_ready(vanilla_net(x, params_f32, tm=128))
    assert y_f32.shape == (N, D_out)
    assert jnp.allclose(y_f32, y_ref, atol=1e-5, rtol=1e-5), \
        "f32 kernel mismatch vs reference"

    # 2) bf16 perf path (default tm): bf16 MXU operands, f32 accumulation and
    #    epilogue -> ~1e-2 level divergence expected.
    params_bf16 = pack_params(w1, b1, w2, b2, w3, b3)
    y_bf16 = jax.block_until_ready(vanilla_net(x, params_bf16))
    assert y_bf16.shape == (N, D_out)
    assert jnp.allclose(y_bf16, y_ref, atol=3e-2, rtol=3e-2), \
        "bf16 kernel mismatch vs reference"

    print("KERNEL_OK")
</pallas_src>

<mosaic_0001>
module attributes {stable_mosaic.version = 11 : i64} {
  func.func @_vanilla_net_kernel(%arg0: i32, %arg1: memref<128x32xf32, #tpu.memory_space<vmem>>, %arg2: memref<32x80xf32, #tpu.memory_space<vmem>>, %arg3: memref<1x64xf32, #tpu.memory_space<vmem>>, %arg4: memref<64x16xf32, #tpu.memory_space<vmem>>, %arg5: memref<1x16xf32, #tpu.memory_space<vmem>>, %arg6: memref<128x16xf32, #tpu.memory_space<vmem>>) attributes {dimension_semantics = [#tpu.dimension_semantics<parallel>], iteration_bounds = array<i64: 2>, scalar_prefetch = 0 : i64, scratch_operands = 0 : i64, tpu.core_type = #tpu.core_type<tc>, window_params = [{transform_indices = @transform_0, window_bounds = array<i64: 128, 32>}, {pipeline_mode = #tpu.pipeline_mode<synchronous>, transform_indices = @transform_1, window_bounds = array<i64: 32, 80>}, {pipeline_mode = #tpu.pipeline_mode<synchronous>, transform_indices = @transform_2, window_bounds = array<i64: 1, 64>}, {pipeline_mode = #tpu.pipeline_mode<synchronous>, transform_indices = @transform_3, window_bounds = array<i64: 64, 16>}, {pipeline_mode = #tpu.pipeline_mode<synchronous>, transform_indices = @transform_4, window_bounds = array<i64: 1, 16>}, {transform_indices = @transform_5, window_bounds = array<i64: 128, 16>}]} {
    %c0 = arith.constant 0 : index
    %c0_0 = arith.constant 0 : index
    %0 = vector.load %arg1[%c0, %c0_0] : memref<128x32xf32, #tpu.memory_space<vmem>>, vector<128x32xf32>
    %c0_1 = arith.constant 0 : index
    %c0_2 = arith.constant 0 : index
    %1 = vector.load %arg2[%c0_1, %c0_2] : memref<32x80xf32, #tpu.memory_space<vmem>>, vector<32x80xf32>
    %cst = arith.constant dense<0.000000e+00> : vector<128x80xf32>
    %2 = tpu.matmul %0, %1, %cst {dimension_numbers = #tpu.dot_dimension_numbers<[1], [0], [0], [1], [0, 0, 1, 1], [], []>} : vector<128x32xf32>, vector<32x80xf32>, vector<128x80xf32> -> vector<128x80xf32>
    %3 = vector.extract_strided_slice %2 {offsets = [0, 0], sizes = [128, 64], strides = [1, 1]} : vector<128x80xf32> to vector<128x64xf32>
    %c0_3 = arith.constant 0 : index
    %c0_4 = arith.constant 0 : index
    %4 = vector.load %arg3[%c0_3, %c0_4] : memref<1x64xf32, #tpu.memory_space<vmem>>, vector<1x64xf32>
    %5 = vector.broadcast %4 : vector<1x64xf32> to vector<128x64xf32>
    %6 = arith.addf %3, %5 : vector<128x64xf32>
    %7 = vector.extract_strided_slice %2 {offsets = [0, 64], sizes = [128, 16], strides = [1, 1]} : vector<128x80xf32> to vector<128x16xf32>
    %cst_5 = arith.constant 5.000000e-01 : f32
    %8 = vector.broadcast %cst_5 : f32 to vector<128x64xf32>
    %9 = arith.mulf %8, %6 : vector<128x64xf32>
    %10 = math.tanh %9 : vector<128x64xf32>
    %cst_6 = arith.constant 5.000000e-01 : f32
    %11 = vector.broadcast %cst_6 : f32 to vector<128x64xf32>
    %12 = arith.mulf %11, %10 : vector<128x64xf32>
    %cst_7 = arith.constant 5.000000e-01 : f32
    %13 = vector.broadcast %cst_7 : f32 to vector<128x64xf32>
    %14 = arith.addf %12, %13 : vector<128x64xf32>
    %c0_8 = arith.constant 0 : index
    %c0_9 = arith.constant 0 : index
    %15 = vector.load %arg4[%c0_8, %c0_9] : memref<64x16xf32, #tpu.memory_space<vmem>>, vector<64x16xf32>
    %cst_10 = arith.constant dense<0.000000e+00> : vector<128x16xf32>
    %16 = tpu.matmul %14, %15, %cst_10 {dimension_numbers = #tpu.dot_dimension_numbers<[1], [0], [0], [1], [0, 0, 1, 1], [], []>} : vector<128x64xf32>, vector<64x16xf32>, vector<128x16xf32> -> vector<128x16xf32>
    %17 = arith.addf %16, %7 : vector<128x16xf32>
    %c0_11 = arith.constant 0 : index
    %c0_12 = arith.constant 0 : index
    %18 = vector.load %arg5[%c0_11, %c0_12] : memref<1x16xf32, #tpu.memory_space<vmem>>, vector<1x16xf32>
    %19 = vector.broadcast %18 : vector<1x16xf32> to vector<128x16xf32>
    %20 = arith.addf %17, %19 : vector<128x16xf32>
    %c0_13 = arith.constant 0 : index
    %c0_14 = arith.constant 0 : index
    %21 = vector.load %arg6[%c0_13, %c0_14] : memref<128x16xf32, #tpu.memory_space<vmem>>, vector<128x16xf32>
    tpu.vector_store %arg6[%c0_13, %c0_14], %20 {strides = array<i32>} : memref<128x16xf32, #tpu.memory_space<vmem>>, vector<128x16xf32>,
    return
  }
  func.func @transform_0(%arg0: i32) -> (i32, i32) {
    %c0_i32 = arith.constant 0 : i32
    %c0_i32_0 = arith.constant 0 : i32
    return %arg0, %c0_i32 : i32, i32
  }
  func.func @transform_1(%arg0: i32) -> (i32, i32) {
    %c0_i32 = arith.constant 0 : i32
    %c0_i32_0 = arith.constant 0 : i32
    %c0_i32_1 = arith.constant 0 : i32
    return %c0_i32, %c0_i32_0 : i32, i32
  }
  func.func @transform_2(%arg0: i32) -> (i32, i32) {
    %c0_i32 = arith.constant 0 : i32
    %c0_i32_0 = arith.constant 0 : i32
    %c0_i32_1 = arith.constant 0 : i32
    return %c0_i32, %c0_i32_0 : i32, i32
  }
  func.func @transform_3(%arg0: i32) -> (i32, i32) {
    %c0_i32 = arith.constant 0 : i32
    %c0_i32_0 = arith.constant 0 : i32
    %c0_i32_1 = arith.constant 0 : i32
    return %c0_i32, %c0_i32_0 : i32, i32
  }
  func.func @transform_4(%arg0: i32) -> (i32, i32) {
    %c0_i32 = arith.constant 0 : i32
    %c0_i32_0 = arith.constant 0 : i32
    %c0_i32_1 = arith.constant 0 : i32
    return %c0_i32, %c0_i32_0 : i32, i32
  }
  func.func @transform_5(%arg0: i32) -> (i32, i32) {
    %c0_i32 = arith.constant 0 : i32
    %c0_i32_0 = arith.constant 0 : i32
    return %arg0, %c0_i32 : i32, i32
  }
}

</mosaic_0001>

<bundles_post_ra>
// kernel: tpu_custom_call.1
= control target key start
LH: loop header
LB: loop body
LE: loop exit
PB: predicated region body
PF: predicated region fallthrough
CT: control target
= control target key end

     0   :  { %s1164_s18 = smov 0   ;;  %s1366_s0 = inlined_call_operand.vmem [shape: f32[256,32], index: 0, kind: input, shape index: {}]   ;;  %s1367_s1 = inlined_call_operand.vmem [shape: f32[32,80], index: 1, kind: input, shape index: {}]   ;;  %s1368_s2 = inlined_call_operand.vmem [shape: f32[1,64], index: 2, kind: input, shape index: {}]   ;;  %s1369_s3 = inlined_call_operand.vmem [shape: f32[64,16], index: 3, kind: input, shape index: {}]   ;;  %s1370_s4 = inlined_call_operand.vmem [shape: f32[1,16], index: 4, kind: input, shape index: {}]   ;;  %s1371_s5 = inlined_call_operand.vmem [shape: f32[256,16], index: 5, kind: output, shape index: {}]  }
   0x1 LB: > { %s891_s19 = sadd.s32 4294967295, %s1131_s18   ;;  %p895_p0 = scmp.ge.s32.totalorder %s1131_s18, 1  ;;  %s1131_s18 = sphi %s1164_s18, %s15_s18  }
   0x2   : > { %p188_p1 = scmp.lt.s32.totalorder %s1131_s18, 3 }
   0x4   : > { %p189_p2 = pnand %p895_p0, %p188_p1 }
   0x5   : > { %v244_v0 = vld [vmem:[%s1367_s1] sm:$0xff] (!%p189_p2)  ;;  %v245_v1 = vld [vmem:[%s1367_s1 + $0x8] sm:$0xff] (!%p189_p2)  ;;  %v246_v2 = vld [vmem:[%s1367_s1 + $0x10] sm:$0xff] (!%p189_p2)  ;;  %s896_s26 = sshll.u32 (!%p189_p2), %s891_s19, 4  ;;  %vm248_vm0 = vcmask (!%p189_p2), 261120   ;;  %s1133_s28 = smov (!%p189_p2), 64  }
   0x6   : > { %192 = sbr.rel (%p189_p2) target bundleno = 497 (0x1f1), region = 40  ;;  %v1052_v3 = vpack.c.bf16 (!%p189_p2), %v245_v1, %v244_v0  ;;  %v247_v4 = vld [vmem:[%s1367_s1 + $0x18] sm:$0xff] (!%p189_p2)  ;;  %p217_p3 = scmp.lt.s32.totalorder (!%p189_p2), %s896_s26, 31  ;;  %v529_v22 = vld [vmem:[%s1369_s3] sm:$0xff] (!%p189_p2)  ;;  %v530_v23 = vld [vmem:[%s1369_s3 + $0x8] sm:$0xff] (!%p189_p2)  ;;  %vm601_vm1 = vcmask (!%p189_p2), 523264  }
   0x7   : > { %v1056_v5 = vpack.c.bf16 (!%p189_p2), %v247_v4, %v246_v2  ;;  %v1060_v24 = vpack.c.bf16 (!%p189_p2), %v530_v23, %v529_v22  ;;  %v531_v25 = vld [vmem:[%s1369_s3 + $0x10] sm:$0xff] (!%p189_p2)  ;;  %v532_v26 = vld [vmem:[%s1369_s3 + $0x18] sm:$0xff] (!%p189_p2)  ;;  %v533_v28 = vld [vmem:[%s1369_s3 + $0x20] sm:$0xff] (!%p189_p2)  ;;  %vm818_vm2 = vcmask (!%p189_p2), 130048  }
   0x8   : > { %1053 = vmatprep.subr.bf16.mxu0 (!%p189_p2), %v1052_v3  ;;  %v1064_v27 = vpack.c.bf16 (!%p189_p2), %v532_v26, %v531_v25  ;;  %v534_v29 = vld [vmem:[%s1369_s3 + $0x28] sm:$0xff] (!%p189_p2)  ;;  %v535_v31 = vld [vmem:[%s1369_s3 + $0x30] sm:$0xff] (!%p189_p2)  ;;  %v536_v32 = vld [vmem:[%s1369_s3 + $0x38] sm:$0xff] (!%p189_p2) }
   0x9   : > { %1055 = vmatpush3.bf16.msra.mxu0 (!%p189_p2), %v1052_v3  ;;  %1076 = vmatprep.subr.bf16.mxu1 (!%p189_p2), %v1060_v24  ;;  %v1068_v30 = vpack.c.bf16 (!%p189_p2), %v534_v29, %v533_v28  ;;  %v1072_v33 = vpack.c.bf16 (!%p189_p2), %v536_v32, %v535_v31  ;;  %v1253_v34 = vld [vmem:[%s1368_s2] ss:$0 sm:$0xff] (!%p189_p2) }
   0xa   : > { %1057 = vmatprep.subr.bf16.mxu0 (!%p189_p2), %v1056_v5  ;;  %1080 = vmatpush3.bf16.msra.mxu1 (!%p189_p2), %v1060_v24 }
   0xb   : > { %1077 = vmatprep.subr.bf16.mxu1 (!%p189_p2), %v1064_v27 }
   0xd   : > { %s1373_s26 = smov (!%p217_p3, %s896_s26), 31  ;;  %1059 = vmatpush3.bf16.msra.mxu0 %v1056_v5 }
   0xe   : > { %s897_s29 = sshll.u32 %s1373_s26, 3  ;;  %1061 = vmatprep.subr.bf16.mxu0 %v1060_v24  ;;  %1081 = vmatpush3.bf16.msra.mxu1 %v1064_v27 }
   0xf   : > { %s1192_s7 = scalar_lea.vmem %s1366_s0, %s897_s29  ;;  %1078 = vmatprep.subr.bf16.mxu1 %v1068_v30  ;;  %s1313_s9 = scalar_lea.vmem %s1371_s5, %s897_s29 }
  0x10   : > { %v228_v6 = vld [vmem:[%s1192_s7] sm:$0xff]  ;;  %v229_v7 = vld [vmem:[%s1192_s7 + $0x8] sm:$0xff]  ;;  %v230_v8 = vld [vmem:[%s1192_s7 + $0x10] sm:$0xff] }
  0x11   : > { %988 = vmatprep.mubr.msk.f32.mxu0 %vm248_vm0, %v228_v6  ;;  %v231_v9 = vld [vmem:[%s1192_s7 + $0x18] sm:$0xff]  ;;  %v232_v10 = vld [vmem:[%s1192_s7 + $0x20] sm:$0xff]  ;;  %v233_v11 = vld [vmem:[%s1192_s7 + $0x28] sm:$0xff] }
  0x12   : > { %989 = vmatmul.mubr.msk.f32.vlgmr.msra.gmra.mrb[0].mxu0 %vm248_vm0, %v229_v7  ;;  %v234_v12 = vld [vmem:[%s1192_s7 + $0x30] sm:$0xff]  ;;  %v235_v13 = vld [vmem:[%s1192_s7 + $0x38] sm:$0xff]  ;;  %v236_v14 = vld [vmem:[%s1192_s7 + $0x40] sm:$0xff]  ;;  %1082 = vmatpush3.bf16.msra.mxu1 %v1068_v30 }
  0x13   : > { %991 = vmatprep.mubr.msk.f32.mxu0 %vm248_vm0, %v230_v8  ;;  %v237_v15 = vld [vmem:[%s1192_s7 + $0x48] sm:$0xff]  ;;  %v238_v16 = vld [vmem:[%s1192_s7 + $0x50] sm:$0xff]  ;;  %v239_v17 = vld [vmem:[%s1192_s7 + $0x58] sm:$0xff]  ;;  %1063 = vmatpush3.bf16.msra.mxu0 %v1060_v24 }
  0x14   : > { %v240_v18 = vld [vmem:[%s1192_s7 + $0x60] sm:$0xff]  ;;  %v241_v19 = vld [vmem:[%s1192_s7 + $0x68] sm:$0xff]  ;;  %v242_v20 = vld [vmem:[%s1192_s7 + $0x70] sm:$0xff]  ;;  %1065 = vmatprep.subr.bf16.mxu0 %v1064_v27  ;;  %1079 = vmatprep.subr.bf16.mxu1 %v1072_v33 }
  0x15   : > { %v243_v21 = vld [vmem:[%s1192_s7 + $0x78] sm:$0xff] }
  0x16   : > { %992 = vmatmul.mubr.msk.f32.gmra.mrb[2].mxu0 %vm248_vm0, %v231_v9  ;;  %1083 = vmatpush3.bf16.msra.mxu1 %v1072_v33 }
  0x17   : > { %994 = vmatprep.mubr.msk.f32.mxu0 %vm248_vm0, %v232_v10  ;;  %1067 = vmatpush3.bf16.msra.mxu0 %v1064_v27 }
  0x18   : > { %1069 = vmatprep.subr.bf16.mxu0 %v1068_v30 }
  0x1a   : > { %995 = vmatmul.mubr.msk.f32.gmra.mrb[4].mxu0 %vm248_vm0, %v233_v11 }
  0x1b   : > { %997 = vmatprep.mubr.msk.f32.mxu0 %vm248_vm0, %v234_v12  ;;  %1071 = vmatpush3.bf16.msra.mxu0 %v1068_v30 }
  0x1c   : > { %1073 = vmatprep.subr.bf16.mxu0 %v1072_v33 }
  0x1e   : > { %998 = vmatmul.mubr.msk.f32.gmra.mrb[6].mxu0 %vm248_vm0, %v235_v13 }
  0x1f   : > { %1000 = vmatprep.mubr.msk.f32.mxu0 %vm248_vm0, %v236_v14  ;;  %1075 = vmatpush3.bf16.msra.mxu0 %v1072_v33 }
  0x22   : > { %1001 = vmatmul.mubr.msk.f32.gmra.mrb[8].mxu0 %vm248_vm0, %v237_v15 }
  0x23   : > { %1003 = vmatprep.mubr.msk.f32.mxu0 %vm248_vm0, %v238_v16 }
  0x26   : > { %1004 = vmatmul.mubr.msk.f32.gmra.mrb[10].mxu0 %vm248_vm0, %v239_v17 }
  0x27   : > { %1006 = vmatprep.mubr.msk.f32.mxu0 %vm248_vm0, %v240_v18 }
  0x2a   : > { %1007 = vmatmul.mubr.msk.f32.gmra.mrb[12].mxu0 %vm248_vm0, %v241_v19 }
  0x2b   : > { %1009 = vmatprep.mubr.msk.f32.mxu0 %vm248_vm0, %v242_v20 }
  0x2e   : > { %1010 = vmatmul.mubr.msk.f32.gmra.mrb[14].mxu0 %vm248_vm0, %v243_v21 }
  0xe5   : > { %v990_v35 = vpop.f32.mrb[0].mxu0 }
  0xe6   : > { %v450_v36 = vadd.f32 %v990_v35, %v1253_v34  ;;  %555 = vrot.lane.b32.xlu0 %v990_v35, %s1133_s28  ;;  %v363_v37 = vpop.f32.mrb[1].mxu0 }
  0xe7   : > { %v449_v38 = vadd.f32 %v1253_v34, %v363_v37 }
  0xe8   : > { %v466_v39 = vmul.f32 0.5, %v450_v36 }
  0xe9   : > { %v465_v40 = vmul.f32 0.5, %v449_v38  ;;  %v993_v41 = vpop.f32.mrb[2].mxu0 }
  0xea   : > { %1093 = vtanh.f32 %v466_v39  ;;  %v452_v42 = vadd.f32 %v993_v41, %v1253_v34  ;;  %553 = vrot.lane.b32.xlu0 %v363_v37, %s1133_s28  ;;  %559 = vrot.lane.b32.xlu1 %v993_v41, %s1133_s28  ;;  %v373_v43 = vpop.f32.mrb[3].mxu0 }
  0xeb   : > { %1095 = vtanh.f32 %v465_v40  ;;  %v451_v44 = vadd.f32 %v1253_v34, %v373_v43 }
  0xec   : > { %v468_v45 = vmul.f32 0.5, %v452_v42 }
  0xed   : > { %v467_v46 = vmul.f32 0.5, %v451_v44  ;;  %v996_v47 = vpop.f32.mrb[4].mxu0 }
  0xee   : > { %1097 = vtanh.f32 %v468_v45  ;;  %v454_v48 = vadd.f32 %v996_v47, %v1253_v34  ;;  %557 = vrot.lane.b32.xlu1 %v373_v43, %s1133_s28  ;;  %v383_v49 = vpop.f32.mrb[5].mxu0 }
  0xef   : > { %1099 = vtanh.f32 %v467_v46  ;;  %v453_v50 = vadd.f32 %v1253_v34, %v383_v49  ;;  %561 = vrot.lane.b32.xlu0 %v383_v49, %s1133_s28 }
  0xf0   : > { %v470_v51 = vmul.f32 0.5, %v454_v48 }
  0xf1   : > { %v469_v52 = vmul.f32 0.5, %v453_v50  ;;  %v999_v53 = vpop.f32.mrb[6].mxu0 }
  0xf2   : > { %1101 = vtanh.f32 %v470_v51  ;;  %v456_v54 = vadd.f32 %v999_v53, %v1253_v34  ;;  %563 = vrot.lane.b32.xlu1 %v996_v47, %s1133_s28  ;;  %v393_v55 = vpop.f32.mrb[7].mxu0 }
  0xf3   : > { %1103 = vtanh.f32 %v469_v52  ;;  %v455_v56 = vadd.f32 %v1253_v34, %v393_v55  ;;  %565 = vrot.lane.b32.xlu0 %v393_v55, %s1133_s28 }
  0xf4   : > { %v1094_v57 = vpop.eup %1093  ;;  %v472_v58 = vmul.f32 0.5, %v456_v54 }
  0xf5   : > { %v1096_v59 = vpop.eup %1095  ;;  %v498_v60 = vmul.f32 0.5, %v1094_v57  ;;  %v471_v61 = vmul.f32 0.5, %v455_v56  ;;  %v1002_v62 = vpop.f32.mrb[8].mxu0 }
  0xf6   : > { %v497_v63 = vmul.f32 0.5, %v1096_v59  ;;  %1105 = vtanh.f32 %v472_v58  ;;  %v458_v0 = vadd.f32 %v1002_v62, %v1253_v34  ;;  %567 = vrot.lane.b32.xlu1 %v999_v53, %s1133_s28  ;;  %v403_v1 = vpop.f32.mrb[9].mxu0 }
  0xf7   : > { %1107 = vtanh.f32 %v471_v61  ;;  %v457_v2 = vadd.f32 %v1253_v34, %v403_v1  ;;  %569 = vrot.lane.b32.xlu0 %v403_v1, %s1133_s28  ;;  %v514_v7 = vadd.f32 0.5, %v498_v60 }
  0xf8   : > { %v1098_v3 = vpop.eup %1097  ;;  %v513_v4 = vadd.f32 0.5, %v497_v63  ;;  %v474_v5 = vmul.f32 0.5, %v458_v0 }
  0xf9   : > { %v1100_v6 = vpop.eup %1099  ;;  %v500_v8 = vmul.f32 0.5, %v1098_v3  ;;  %v473_v9 = vmul.f32 0.5, %v457_v2  ;;  %v1005_v10 = vpop.f32.mrb[10].mxu0 }
  0xfa   : > { %1109 = vtanh.f32 %v474_v5  ;;  %v460_v11 = vadd.f32 %v1005_v10, %v1253_v34  ;;  %1028 = vmatprep.mubr.msk.f32.mxu0 %vm601_vm1, %v513_v4  ;;  %571 = vrot.lane.b32.xlu1 %v1002_v62, %s1133_s28  ;;  %v413_v12 = vpop.f32.mrb[11].mxu0  ;;  %v499_v13 = vmul.f32 0.5, %v1100_v6 }
  0xfb   : > { %1111 = vtanh.f32 %v473_v9  ;;  %v459_v14 = vadd.f32 %v1253_v34, %v413_v12  ;;  %1029 = vmatmul.mubr.msk.f32.vlgmr.msra.gmra.mrb[16].mxu0 %vm601_vm1, %v514_v7  ;;  %573 = vrot.lane.b32.xlu0 %v413_v12, %s1133_s28  ;;  %v516_v19 = vadd.f32 0.5, %v500_v8 }
  0xfc   : > { %v1102_v15 = vpop.eup %1101  ;;  %v476_v16 = vmul.f32 0.5, %v460_v11  ;;  %v515_v17 = vadd.f32 0.5, %v499_v13 }
  0xfd   : > { %v1104_v18 = vpop.eup %1103  ;;  %v502_v20 = vmul.f32 0.5, %v1102_v15  ;;  %v475_v21 = vmul.f32 0.5, %v459_v14  ;;  %v1008_v22 = vpop.f32.mrb[12].mxu0 }
  0xfe   : > { %v501_v23 = vmul.f32 0.5, %v1104_v18  ;;  %1113 = vtanh.f32 %v476_v16  ;;  %v462_v24 = vadd.f32 %v1008_v22, %v1253_v34  ;;  %1031 = vmatprep.mubr.msk.f32.mxu1 %vm601_vm1, %v515_v17  ;;  %575 = vrot.lane.b32.xlu1 %v1005_v10, %s1133_s28  ;;  %v423_v25 = vpop.f32.mrb[13].mxu0  ;;  %v1306_v10 = vld [vmem:[%s1370_s4] ss:$0 sm:$0xff] }
  0xff   : > { %1115 = vtanh.f32 %v475_v21  ;;  %v461_v26 = vadd.f32 %v1253_v34, %v423_v25  ;;  %1032 = vmatmul.mubr.msk.f32.vlgmr.msra.gmra.mrb[0].mxu1 %vm601_vm1, %v516_v19  ;;  %577 = vrot.lane.b32.xlu0 %v423_v25, %s1133_s28  ;;  %v518_v31 = vadd.f32 0.5, %v502_v20 }
 0x100   : > { %v1106_v27 = vpop.eup %1105  ;;  %v517_v28 = vadd.f32 0.5, %v501_v23  ;;  %v478_v29 = vmul.f32 0.5, %v462_v24 }
 0x101   : > { %v1108_v30 = vpop.eup %1107  ;;  %v504_v32 = vmul.f32 0.5, %v1106_v27  ;;  %v477_v33 = vmul.f32 0.5, %v461_v26  ;;  %v1011_v35 = vpop.f32.mrb[14].mxu0 }
 0x102   : > { %v503_v36 = vmul.f32 0.5, %v1108_v30  ;;  %1117 = vtanh.f32 %v478_v29  ;;  %v464_v37 = vadd.f32 %v1011_v35, %v1253_v34  ;;  %1034 = vmatprep.mubr.msk.f32.mxu1 %vm601_vm1, %v517_v28  ;;  %579 = vrot.lane.b32.xlu1 %v1008_v22, %s1133_s28  ;;  %v433_v38 = vpop.f32.mrb[15].mxu0 }
 0x103   : > { %1119 = vtanh.f32 %v477_v33  ;;  %v463_v39 = vadd.f32 %v1253_v34, %v433_v38  ;;  %1035 = vmatmul.mubr.msk.f32.gmra.mrb[2].mxu1 %vm601_vm1, %v518_v31  ;;  %581 = vrot.lane.b32.xlu0 %v433_v38, %s1133_s28  ;;  %v520_v44 = vadd.f32 0.5, %v504_v32 }
 0x104   : > { %v1110_v40 = vpop.eup %1109  ;;  %v519_v41 = vadd.f32 0.5, %v503_v36  ;;  %v480_v42 = vmul.f32 0.5, %v464_v37 }
 0x105   : > { %v1112_v43 = vpop.eup %1111  ;;  %v506_v45 = vmul.f32 0.5, %v1110_v40  ;;  %v479_v46 = vmul.f32 0.5, %v463_v39 }
 0x106   : > { %v505_v47 = vmul.f32 0.5, %v1112_v43  ;;  %1121 = vtanh.f32 %v480_v42  ;;  %1037 = vmatprep.mubr.msk.f32.mxu1 %vm601_vm1, %v519_v41  ;;  %583 = vrot.lane.b32.xlu1 %v1011_v35, %s1133_s28 }
 0x107   : > { %1123 = vtanh.f32 %v479_v46  ;;  %1038 = vmatmul.mubr.msk.f32.gmra.mrb[4].mxu1 %vm601_vm1, %v520_v44  ;;  %v522_v50 = vadd.f32 0.5, %v506_v45 }
 0x108   : > { %v1114_v34 = vpop.eup %1113  ;;  %v521_v48 = vadd.f32 0.5, %v505_v47 }
 0x109   : > { %v1116_v49 = vpop.eup %1115  ;;  %v508_v51 = vmul.f32 0.5, %v1114_v34 }
 0x10a   : > { %v507_v52 = vmul.f32 0.5, %v1116_v49  ;;  %1040 = vmatprep.mubr.msk.f32.mxu1 %vm601_vm1, %v521_v48 }
 0x10b   : > { %1041 = vmatmul.mubr.msk.f32.gmra.mrb[6].mxu1 %vm601_vm1, %v522_v50  ;;  %v524_v56 = vadd.f32 0.5, %v508_v51 }
 0x10c   : > { %v1118_v53 = vpop.eup %1117  ;;  %v523_v54 = vadd.f32 0.5, %v507_v52 }
 0x10d   : > { %v1120_v55 = vpop.eup %1119  ;;  %v510_v57 = vmul.f32 0.5, %v1118_v53 }
 0x10e   : > { %v509_v58 = vmul.f32 0.5, %v1120_v55  ;;  %1043 = vmatprep.mubr.msk.f32.mxu1 %vm601_vm1, %v523_v54 }
 0x10f   : > { %1044 = vmatmul.mubr.msk.f32.gmra.mrb[8].mxu1 %vm601_vm1, %v524_v56  ;;  %v526_v62 = vadd.f32 0.5, %v510_v57 }
 0x110   : > { %v1122_v59 = vpop.eup %1121  ;;  %v525_v60 = vadd.f32 0.5, %v509_v58 }
 0x111   : > { %v1124_v61 = vpop.eup %1123  ;;  %v512_v63 = vmul.f32 0.5, %v1122_v59 }
 0x112   : > { %v511_v0 = vmul.f32 0.5, %v1124_v61  ;;  %1046 = vmatprep.mubr.msk.f32.mxu1 %vm601_vm1, %v525_v60 }
 0x113   : > { %1047 = vmatmul.mubr.msk.f32.gmra.mrb[10].mxu1 %vm601_vm1, %v526_v62  ;;  %v528_v2 = vadd.f32 0.5, %v512_v63 }
 0x114   : > { %v527_v1 = vadd.f32 0.5, %v511_v0 }
 0x116   : > { %1049 = vmatprep.mubr.msk.f32.mxu1 %vm601_vm1, %v527_v1 }
 0x117   : > { %1050 = vmatmul.mubr.msk.f32.gmra.mrb[12].mxu1 %vm601_vm1, %v528_v2 }
 0x158   : > { %v556_v4 = vpop.permute.xlu0 %555 }
 0x15c   : > { %v560_v3 = vpop.permute.xlu1 %559  ;;  %v554_v6 = vpop.permute.xlu0 %553 }
 0x160   : > { %v558_v5 = vpop.permute.xlu1 %557 }
 0x161   : > { %v562_v8 = vpop.permute.xlu0 %561 }
 0x164   : > { %v564_v7 = vpop.permute.xlu1 %563 }
 0x165   : > { %v566_v18 = vpop.permute.xlu0 %565 }
 0x168   : > { %v568_v15 = vpop.permute.xlu1 %567 }
 0x169   : > { %v570_v29 = vpop.permute.xlu0 %569 }
 0x16c   : > { %v572_v27 = vpop.permute.xlu1 %571 }
 0x16d   : > { %v574_v41 = vpop.permute.xlu0 %573 }
 0x170   : > { %v576_v38 = vpop.permute.xlu1 %575 }
 0x171   : > { %v578_v51 = vpop.permute.xlu0 %577 }
 0x174   : > { %v580_v49 = vpop.permute.xlu1 %579 }
 0x175   : > { %v582_v62 = vpop.permute.xlu0 %581 }
 0x178   : > { %v584_v59 = vpop.permute.xlu1 %583 }
 0x1ce   : > { %v1030_v9 = vpop.f32.mrb[16].mxu0 }
 0x1cf   : > { %v722_v11 = vadd.f32 %v1030_v9, %v556_v4  ;;  %v716_v12 = vpop.f32.mrb[17].mxu0 }
 0x1d0   : > { %v717_v13 = vadd.f32 %v716_v12, %v554_v6 }
 0x1d1   : > { %v803_v14 = vadd.f32 %v1306_v10, %v722_v11 }
 0x1d2   : > { %v802_v16 = vadd.f32 %v1306_v10, %v717_v13  ;;  %v1033_v17 = vpop.f32.mrb[0].mxu1 }
 0x1d3   : > { %820 = vst.msk [vmem:[%s1313_s9 + $0x8] sm:$0xff] %vm818_vm2, %v803_v14  ;;  %v732_v19 = vadd.f32 %v1033_v17, %v560_v3  ;;  %v726_v20 = vpop.f32.mrb[1].mxu1 }
 0x1d4   : > { %819 = vst.msk [vmem:[%s1313_s9] sm:$0xff] %vm818_vm2, %v802_v16  ;;  %v727_v21 = vadd.f32 %v726_v20, %v558_v5 }
 0x1d5   : > { %v805_v22 = vadd.f32 %v1306_v10, %v732_v19 }
 0x1d6   : > { %v804_v23 = vadd.f32 %v1306_v10, %v727_v21  ;;  %v1036_v24 = vpop.f32.mrb[2].mxu1 }
 0x1d7   : > { %822 = vst.msk [vmem:[%s1313_s9 + $0x18] sm:$0xff] %vm818_vm2, %v805_v22  ;;  %v742_v25 = vadd.f32 %v1036_v24, %v564_v7  ;;  %v736_v26 = vpop.f32.mrb[3].mxu1 }
 0x1d8   : > { %821 = vst.msk [vmem:[%s1313_s9 + $0x10] sm:$0xff] %vm818_vm2, %v804_v23  ;;  %v737_v28 = vadd.f32 %v736_v26, %v562_v8 }
 0x1d9   : > { %v807_v30 = vadd.f32 %v1306_v10, %v742_v25 }
 0x1da   : > { %v806_v31 = vadd.f32 %v1306_v10, %v737_v28  ;;  %v1039_v32 = vpop.f32.mrb[4].mxu1 }
 0x1db   : > { %824 = vst.msk [vmem:[%s1313_s9 + $0x28] sm:$0xff] %vm818_vm2, %v807_v30  ;;  %v752_v33 = vadd.f32 %v1039_v32, %v568_v15  ;;  %v746_v35 = vpop.f32.mrb[5].mxu1 }
 0x1dc   : > { %823 = vst.msk [vmem:[%s1313_s9 + $0x20] sm:$0xff] %vm818_vm2, %v806_v31  ;;  %v747_v36 = vadd.f32 %v746_v35, %v566_v18 }
 0x1dd   : > { %v809_v37 = vadd.f32 %v1306_v10, %v752_v33 }
 0x1de   : > { %v808_v39 = vadd.f32 %v1306_v10, %v747_v36  ;;  %v1042_v40 = vpop.f32.mrb[6].mxu1 }
 0x1df   : > { %826 = vst.msk [vmem:[%s1313_s9 + $0x38] sm:$0xff] %vm818_vm2, %v809_v37  ;;  %v762_v42 = vadd.f32 %v1042_v40, %v572_v27  ;;  %v756_v43 = vpop.f32.mrb[7].mxu1 }
 0x1e0   : > { %825 = vst.msk [vmem:[%s1313_s9 + $0x30] sm:$0xff] %vm818_vm2, %v808_v39  ;;  %v757_v44 = vadd.f32 %v756_v43, %v570_v29 }
 0x1e1   : > { %v811_v45 = vadd.f32 %v1306_v10, %v762_v42 }
 0x1e2   : > { %v810_v46 = vadd.f32 %v1306_v10, %v757_v44  ;;  %v1045_v47 = vpop.f32.mrb[8].mxu1 }
 0x1e3   : > { %828 = vst.msk [vmem:[%s1313_s9 + $0x48] sm:$0xff] %vm818_vm2, %v811_v45  ;;  %v772_v34 = vadd.f32 %v1045_v47, %v576_v38  ;;  %v766_v48 = vpop.f32.mrb[9].mxu1 }
 0x1e4   : > { %827 = vst.msk [vmem:[%s1313_s9 + $0x40] sm:$0xff] %vm818_vm2, %v810_v46  ;;  %v767_v50 = vadd.f32 %v766_v48, %v574_v41 }
 0x1e5   : > { %v813_v52 = vadd.f32 %v1306_v10, %v772_v34 }
 0x1e6   : > { %v812_v53 = vadd.f32 %v1306_v10, %v767_v50  ;;  %v1048_v54 = vpop.f32.mrb[10].mxu1 }
 0x1e7   : > { %830 = vst.msk [vmem:[%s1313_s9 + $0x58] sm:$0xff] %vm818_vm2, %v813_v52  ;;  %v782_v55 = vadd.f32 %v1048_v54, %v580_v49  ;;  %v776_v56 = vpop.f32.mrb[11].mxu1 }
 0x1e8   : > { %829 = vst.msk [vmem:[%s1313_s9 + $0x50] sm:$0xff] %vm818_vm2, %v812_v53  ;;  %v777_v57 = vadd.f32 %v776_v56, %v578_v51 }
 0x1e9   : > { %v815_v58 = vadd.f32 %v1306_v10, %v782_v55 }
 0x1ea   : > { %v814_v60 = vadd.f32 %v1306_v10, %v777_v57  ;;  %v1051_v61 = vpop.f32.mrb[12].mxu1 }
 0x1eb   : > { %832 = vst.msk [vmem:[%s1313_s9 + $0x68] sm:$0xff] %vm818_vm2, %v815_v58  ;;  %v792_v63 = vadd.f32 %v1051_v61, %v584_v59  ;;  %v786_v0 = vpop.f32.mrb[13].mxu1 }
 0x1ec   : > { %831 = vst.msk [vmem:[%s1313_s9 + $0x60] sm:$0xff] %vm818_vm2, %v814_v60  ;;  %v787_v1 = vadd.f32 %v786_v0, %v582_v62 }
 0x1ed   : > { %v817_v2 = vadd.f32 %v1306_v10, %v792_v63 }
 0x1ee   : > { %v816_v3 = vadd.f32 %v1306_v10, %v787_v1 }
 0x1ef   : > { %834 = vst.msk [vmem:[%s1313_s9 + $0x78] sm:$0xff] %vm818_vm2, %v817_v2 }
 0x1f0   : > { %833 = vst.msk [vmem:[%s1313_s9 + $0x70] sm:$0xff] %vm818_vm2, %v816_v3 }
 0x1f1 PF: > { %s15_s18 = sadd.s32 1, %s1131_s18  }
 0x1f2   : > { %p12_p4 = scmp.ge.s32.totalorder %s15_s18, 4  }
 0x1f4   :  { %14 = sbr.rel (!%p12_p4) target bundleno = 1 (0x1), region = 70 }

</bundles_post_ra>
